<compile_context>
chip_gen: v6e
topology: v6e:2x2x1
jax: 0.10.0
libtpu: 0.0.40
codegen_flags: <defaults>
</compile_context>

<pallas_src>
import numpy as np
import jax
import jax.numpy as jnp
from jax.experimental import pallas as pl
from jax.experimental.pallas import tpu as pltpu


def _round_up(x, m):
    return ((x + m - 1) // m) * m


# ----------------------------------------------------------------------------
# Pallas kernel:
#   out = relu(x_tile @ W1'  +  A_tile @ YW2[n]  +  shift')
# where W1'/YW2 already have the BN scale folded in and
# shift' = conv_bias * bn_scale + bn_shift.
# ----------------------------------------------------------------------------
def _ppm_head_kernel(x_ref, a_ref, yw2_ref, w1_ref, t_ref, o_ref):
    acc = jnp.dot(x_ref[...], w1_ref[...], preferred_element_type=jnp.float32)
    acc = acc + jnp.dot(a_ref[...], yw2_ref[...],
                        preferred_element_type=jnp.float32)
    acc = acc + t_ref[...]
    o_ref[...] = jnp.maximum(acc, 0.0).astype(o_ref.dtype)


def fused_ppm_head(x_rows, A, YW2, w1, shift, *, tm):
    """x_rows: (N, HWp, Cp) bf16; A: (HWp, Pp) bf16; YW2: (N, Pp, Cp) bf16;
    w1: (Cp, Cp) bf16 (BN scale folded); shift: (1, Cp) f32.
    Returns (N, HWp, Cp) f32 = relu(BN(conv([x | upsampled pyramid])))."""
    N, HWp, Cp = x_rows.shape
    Pp = A.shape[1]
    assert HWp % tm == 0

    return pl.pallas_call(
        _ppm_head_kernel,
        out_shape=jax.ShapeDtypeStruct((N, HWp, Cp), jnp.float32),
        grid_spec=pltpu.PrefetchScalarGridSpec(
            num_scalar_prefetch=0,
            grid=(N, HWp // tm),
            in_specs=[
                pl.BlockSpec((None, tm, Cp), lambda n, i: (n, i, 0)),  # x rows
                pl.BlockSpec((tm, Pp), lambda n, i: (i, 0)),           # interp slab
                pl.BlockSpec((None, Pp, Cp), lambda n, i: (n, 0, 0)),  # Y @ W2'
                pl.BlockSpec((Cp, Cp), lambda n, i: (0, 0)),           # W1'
                pl.BlockSpec((1, Cp), lambda n, i: (0, 0)),            # fused shift
            ],
            out_specs=pl.BlockSpec((None, tm, Cp), lambda n, i: (n, i, 0)),
        ),
        compiler_params=pltpu.CompilerParams(
            dimension_semantics=("parallel", "parallel")),
    )(x_rows, A, YW2, w1, shift)


# ----------------------------------------------------------------------------
# Glue (plain JAX / numpy): per-bin branches & constant interpolation slab.
# Each branch touches only bin*bin <= 64 spatial positions -> negligible.
# ----------------------------------------------------------------------------
def adaptive_avg_pool_nhwc(x, bin_size):
    """PyTorch AdaptiveAvgPool2d semantics on NHWC input."""
    N, H, W, C = x.shape
    rows = []
    for i in range(bin_size):
        h0 = (i * H) // bin_size
        h1 = -(-((i + 1) * H) // bin_size)
        cols = []
        for j in range(bin_size):
            w0 = (j * W) // bin_size
            w1 = -(-((j + 1) * W) // bin_size)
            cols.append(jnp.mean(x[:, h0:h1, w0:w1, :], axis=(1, 2)))
        rows.append(jnp.stack(cols, axis=1))
    return jnp.stack(rows, axis=1)  # (N, bin, bin, C)


def bilinear_matrix(out_size, in_size):
    """Interpolation matrix matching F.interpolate(mode='bilinear', align_corners=True)."""
    if in_size == 1:
        return np.ones((out_size, 1), np.float32)
    M = np.zeros((out_size, in_size), np.float32)
    denom = max(out_size - 1, 1)
    for i in range(out_size):
        src = i * (in_size - 1) / denom
        lo = min(int(np.floor(src)), in_size - 2)
        frac = src - lo
        M[i, lo] += 1.0 - frac
        M[i, lo + 1] += frac
    return M


def build_interp_slab(H, W, bins):
    """(H*W, sum(b*b)) constant: up_flat(n) = A @ Y[n] reproduces the bilinear
    upsample + channel-concat of all pyramid branches."""
    mats = []
    for b in bins:
        Uh = bilinear_matrix(H, b)
        Uw = bilinear_matrix(W, b)
        Ab = np.einsum('hp,wq->hwpq', Uh, Uw).reshape(H * W, b * b)
        mats.append(Ab)
    return jnp.asarray(np.concatenate(mats, axis=1), jnp.float32)


def bn_fold(gamma, beta, mean, var, eps=1e-5):
    scale = gamma / jnp.sqrt(var + eps)
    shift = beta - mean * scale
    return scale, shift


def branch_activations(x_nhwc, bin_size, p):
    """AdaptiveAvgPool -> 1x1 conv -> BN (inference) -> LeakyReLU(0.1)."""
    pooled = adaptive_avg_pool_nhwc(x_nhwc, bin_size)           # (N,b,b,Cin)
    y = jnp.einsum('npqc,cr->npqr', pooled, p["w"]) + p["b"]    # 1x1 conv
    y = y * p["scale"] + p["shift"]                             # BN (inference)
    return jnp.where(y > 0, y, 0.1 * y)                         # LeakyReLU(0.1)


def build_pyramid_table(x_nhwc, bins, branches, C):
    """(N, sum(b*b), C): each branch's activations in its channel slab."""
    N = x_nhwc.shape[0]
    blocks, off_c = [], 0
    for b, p in zip(bins, branches):
        rc = p["w"].shape[1]
        y = branch_activations(x_nhwc, b, p).reshape(N, b * b, rc)
        blocks.append(jnp.pad(y, ((0, 0), (0, 0), (off_c, C - off_c - rc))))
        off_c += rc
    return jnp.concatenate(blocks, axis=1)


# ----------------------------------------------------------------------------
# Full PPM forward
# ----------------------------------------------------------------------------
def ppm_forward(x_nchw, params, bins, *, tm=512):
    N, C, H, W = x_nchw.shape
    rc = params["branches"][0]["w"].shape[1]
    assert len(bins) * rc == C, "PPM requires len(bins)*reduction_dim == in_dim"

    x = jnp.transpose(x_nchw, (0, 2, 3, 1)).astype(jnp.float32)  # NHWC
    HW = H * W
    Cp = _round_up(C, 128)                  # lane-dense channel padding
    P = sum(b * b for b in bins)
    Pp = _round_up(P, 128)

    # Fold conv bias + inference-BN scale/shift into the weights / one shift.
    scale, shift = params["bn_scale"], params["bn_shift"]
    w1 = params["conv_w"][:C] * scale[None, :]      # multiplies x channels
    w2 = params["conv_w"][C:] * scale[None, :]      # multiplies pyramid channels
    fused_shift = params["conv_b"] * scale + shift
    w1 = jnp.pad(w1, ((0, Cp - C), (0, Cp - C)))
    fused_shift = jnp.pad(fused_shift, (0, Cp - C)).reshape(1, Cp)

    # Tiny pooled branch table (N, P, C), pre-contracted with the pyramid half
    # of the conv weight in f32 (negligible work: N*P*C*C flops), plus the
    # constant interpolation slab (HW, P).
    Y = build_pyramid_table(x, bins, params["branches"], C)      # (N, P, C)
    YW2 = jnp.einsum('npc,cd->npd', Y, w2)                        # (N, P, C)
    YW2 = jnp.pad(YW2, ((0, 0), (0, Pp - P), (0, Cp - C)))
    A = jnp.pad(build_interp_slab(H, W, bins), ((0, 0), (0, Pp - P)))

    # Row padding & tile size (no tail blocks, no masked stores).
    tm_eff = min(tm, _round_up(HW, 8))
    HWp = _round_up(HW, tm_eff)
    x_rows = jnp.pad(x.reshape(N, HW, C),
                     ((0, 0), (0, HWp - HW), (0, Cp - C)))
    A = jnp.pad(A, ((0, HWp - HW), (0, 0)))

    out = fused_ppm_head(
        x_rows.astype(jnp.bfloat16), A.astype(jnp.bfloat16),
        YW2.astype(jnp.bfloat16), w1.astype(jnp.bfloat16),
        fused_shift.astype(jnp.float32),
        tm=tm_eff)

    out = out[:, :HW, :C].reshape(N, H, W, C)
    return jnp.transpose(out, (0, 3, 1, 2))          # back to NCHW


# ----------------------------------------------------------------------------
# Pure-jnp f32 reference (no Pallas, no padding, no bf16)
# ----------------------------------------------------------------------------
def ppm_reference(x_nchw, params, bins):
    N, C, H, W = x_nchw.shape
    x = jnp.transpose(x_nchw, (0, 2, 3, 1)).astype(jnp.float32)
    ups = []
    for b, p in zip(bins, params["branches"]):
        y = branch_activations(x, b, p)
        Uh = jnp.asarray(bilinear_matrix(H, b))
        Uw = jnp.asarray(bilinear_matrix(W, b))
        ups.append(jnp.einsum('hp,wq,npqr->nhwr', Uh, Uw, y))
    up = jnp.concatenate(ups, axis=-1)
    x_flat = x.reshape(-1, C)
    up_flat = up.reshape(-1, C)
    acc = (x_flat @ params["conv_w"][:C] + up_flat @ params["conv_w"][C:]
           + params["conv_b"])
    out = jnp.maximum(acc * params["bn_scale"] + params["bn_shift"], 0.0)
    return out.reshape(N, H, W, C).transpose(0, 3, 1, 2)


def init_params(key, in_dim, reduction_dim, bins):
    params = {"branches": []}
    keys = jax.random.split(key, 4 * len(bins) + 6)
    k = iter(keys)
    for _ in bins:
        w = 0.1 * jax.random.normal(next(k), (in_dim, reduction_dim), jnp.float32)
        b = 0.05 * jax.random.normal(next(k), (reduction_dim,), jnp.float32)
        gamma = 1.0 + 0.1 * jax.random.normal(next(k), (reduction_dim,), jnp.float32)
        beta = 0.05 * jax.random.normal(next(k), (reduction_dim,), jnp.float32)
        mean = jnp.zeros((reduction_dim,), jnp.float32)
        var = jnp.ones((reduction_dim,), jnp.float32)
        scale, shift = bn_fold(gamma, beta, mean, var)
        params["branches"].append({"w": w, "b": b, "scale": scale, "shift": shift})

    params["conv_w"] = 0.1 * jax.random.normal(next(k), (2 * in_dim, in_dim), jnp.float32)
    params["conv_b"] = 0.05 * jax.random.normal(next(k), (in_dim,), jnp.float32)
    gamma = 1.0 + 0.1 * jax.random.normal(next(k), (in_dim,), jnp.float32)
    beta = 0.05 * jax.random.normal(next(k), (in_dim,), jnp.float32)
    mean = jnp.zeros((in_dim,), jnp.float32)
    var = jnp.ones((in_dim,), jnp.float32)
    params["bn_scale"], params["bn_shift"] = bn_fold(gamma, beta, mean, var)
    return params


if __name__ == "__main__":
    # Shapes: in_dim=8, reduction_dim=2, bins=(1,2,4,8) -> len(bins)*rc == in_dim
    # (required by the module's Conv2d(in_dim*2, in_dim)); x: (2, 8, 16, 16).
    in_dim, reduction_dim, bins = 8, 2, (1, 2, 4, 8)
    N, H, W = 2, 16, 16

    root = jax.random.PRNGKey(0)
    kx, kp = jax.random.split(root)
    x = jax.random.normal(kx, (N, in_dim, H, W), jnp.float32)
    params = init_params(kp, in_dim, reduction_dim, bins)

    out = jax.block_until_ready(ppm_forward(x, params, bins))
    assert out.shape == (N, in_dim, H, W)

    # Cross-check against the pure-jnp f32 reference (kernel runs in bf16 on
    # the MXU with f32 accumulation, hence the relaxed tolerance).
    ref = jax.block_until_ready(ppm_reference(x, params, bins))
    np.testing.assert_allclose(np.asarray(out), np.asarray(ref),
                               rtol=2e-2, atol=2e-2)

    print("KERNEL_OK")
</pallas_src>

<mosaic_0001>
module attributes {stable_mosaic.version = 11 : i64} {
  func.func @_ppm_head_kernel(%arg0: i32, %arg1: i32, %arg2: memref<1x256x128xbf16, #tpu.memory_space<vmem>>, %arg3: memref<256x128xbf16, #tpu.memory_space<vmem>>, %arg4: memref<1x128x128xbf16, #tpu.memory_space<vmem>>, %arg5: memref<128x128xbf16, #tpu.memory_space<vmem>>, %arg6: memref<1x128xf32, #tpu.memory_space<vmem>>, %arg7: memref<1x256x128xf32, #tpu.memory_space<vmem>>) attributes {dimension_semantics = [#tpu.dimension_semantics<parallel>, #tpu.dimension_semantics<parallel>], iteration_bounds = array<i64: 2, 1>, scalar_prefetch = 0 : i64, scratch_operands = 0 : i64, tpu.core_type = #tpu.core_type<tc>, window_params = [{transform_indices = @transform_0, window_bounds = array<i64: 1, 256, 128>}, {transform_indices = @transform_1, window_bounds = array<i64: 256, 128>}, {transform_indices = @transform_2, window_bounds = array<i64: 1, 128, 128>}, {pipeline_mode = #tpu.pipeline_mode<synchronous>, transform_indices = @transform_3, window_bounds = array<i64: 128, 128>}, {pipeline_mode = #tpu.pipeline_mode<synchronous>, transform_indices = @transform_4, window_bounds = array<i64: 1, 128>}, {transform_indices = @transform_5, window_bounds = array<i64: 1, 256, 128>}]} {
    %c0 = arith.constant 0 : index
    %c0_0 = arith.constant 0 : index
    %c0_1 = arith.constant 0 : index
    %0 = vector.load %arg2[%c0, %c0_0, %c0_1] : memref<1x256x128xbf16, #tpu.memory_space<vmem>>, vector<1x256x128xbf16>
    %1 = vector.shape_cast %0 : vector<1x256x128xbf16> to vector<256x128xbf16>
    %c0_2 = arith.constant 0 : index
    %c0_3 = arith.constant 0 : index
    %2 = vector.load %arg5[%c0_2, %c0_3] : memref<128x128xbf16, #tpu.memory_space<vmem>>, vector<128x128xbf16>
    %cst = arith.constant dense<0.000000e+00> : vector<256x128xf32>
    %3 = tpu.matmul %1, %2, %cst {dimension_numbers = #tpu.dot_dimension_numbers<[1], [0], [0], [1], [0, 0, 1, 1], [], []>} : vector<256x128xbf16>, vector<128x128xbf16>, vector<256x128xf32> -> vector<256x128xf32>
    %c0_4 = arith.constant 0 : index
    %c0_5 = arith.constant 0 : index
    %4 = vector.load %arg3[%c0_4, %c0_5] : memref<256x128xbf16, #tpu.memory_space<vmem>>, vector<256x128xbf16>
    %c0_6 = arith.constant 0 : index
    %c0_7 = arith.constant 0 : index
    %c0_8 = arith.constant 0 : index
    %5 = vector.load %arg4[%c0_6, %c0_7, %c0_8] : memref<1x128x128xbf16, #tpu.memory_space<vmem>>, vector<1x128x128xbf16>
    %6 = vector.shape_cast %5 : vector<1x128x128xbf16> to vector<128x128xbf16>
    %cst_9 = arith.constant dense<0.000000e+00> : vector<256x128xf32>
    %7 = tpu.matmul %4, %6, %cst_9 {dimension_numbers = #tpu.dot_dimension_numbers<[1], [0], [0], [1], [0, 0, 1, 1], [], []>} : vector<256x128xbf16>, vector<128x128xbf16>, vector<256x128xf32> -> vector<256x128xf32>
    %8 = arith.addf %3, %7 : vector<256x128xf32>
    %c0_10 = arith.constant 0 : index
    %c0_11 = arith.constant 0 : index
    %9 = vector.load %arg6[%c0_10, %c0_11] : memref<1x128xf32, #tpu.memory_space<vmem>>, vector<1x128xf32>
    %10 = vector.broadcast %9 : vector<1x128xf32> to vector<256x128xf32>
    %11 = arith.addf %8, %10 : vector<256x128xf32>
    %cst_12 = arith.constant 0.000000e+00 : f32
    %12 = vector.broadcast %cst_12 : f32 to vector<256x128xf32>
    %13 = arith.maximumf %11, %12 : vector<256x128xf32>
    %c0_13 = arith.constant 0 : index
    %c0_14 = arith.constant 0 : index
    %c0_15 = arith.constant 0 : index
    %14 = vector.load %arg7[%c0_13, %c0_14, %c0_15] : memref<1x256x128xf32, #tpu.memory_space<vmem>>, vector<1x256x128xf32>
    %15 = vector.shape_cast %14 : vector<1x256x128xf32> to vector<256x128xf32>
    %16 = vector.shape_cast %13 : vector<256x128xf32> to vector<1x256x128xf32>
    tpu.vector_store %arg7[%c0_13, %c0_14, %c0_15], %16 {strides = array<i32>} : memref<1x256x128xf32, #tpu.memory_space<vmem>>, vector<1x256x128xf32>,
    return
  }
  func.func @transform_0(%arg0: i32, %arg1: i32) -> (i32, i32, i32) {
    %c0_i32 = arith.constant 0 : i32
    %c0_i32_0 = arith.constant 0 : i32
    return %arg0, %arg1, %c0_i32 : i32, i32, i32
  }
  func.func @transform_1(%arg0: i32, %arg1: i32) -> (i32, i32) {
    %c0_i32 = arith.constant 0 : i32
    %c0_i32_0 = arith.constant 0 : i32
    return %arg1, %c0_i32 : i32, i32
  }
  func.func @transform_2(%arg0: i32, %arg1: i32) -> (i32, i32, i32) {
    %c0_i32 = arith.constant 0 : i32
    %c0_i32_0 = arith.constant 0 : i32
    %c0_i32_1 = arith.constant 0 : i32
    return %arg0, %c0_i32, %c0_i32_0 : i32, i32, i32
  }
  func.func @transform_3(%arg0: i32, %arg1: i32) -> (i32, i32) {
    %c0_i32 = arith.constant 0 : i32
    %c0_i32_0 = arith.constant 0 : i32
    %c0_i32_1 = arith.constant 0 : i32
    return %c0_i32, %c0_i32_0 : i32, i32
  }
  func.func @transform_4(%arg0: i32, %arg1: i32) -> (i32, i32) {
    %c0_i32 = arith.constant 0 : i32
    %c0_i32_0 = arith.constant 0 : i32
    %c0_i32_1 = arith.constant 0 : i32
    return %c0_i32, %c0_i32_0 : i32, i32
  }
  func.func @transform_5(%arg0: i32, %arg1: i32) -> (i32, i32, i32) {
    %c0_i32 = arith.constant 0 : i32
    %c0_i32_0 = arith.constant 0 : i32
    return %arg0, %arg1, %c0_i32 : i32, i32, i32
  }
}

</mosaic_0001>

<bundles_post_ra>
// kernel: tpu_custom_call.1
= control target key start
LH: loop header
LB: loop body
LE: loop exit
PB: predicated region body
PF: predicated region fallthrough
CT: control target
= control target key end

     0   :  { %s2222_s0 = inlined_call_operand.hbm [shape: bf16[2,256,128], index: 0, kind: input, shape index: {}]   ;;  %s2223_s1 = inlined_call_operand.hbm [shape: bf16[256,128], index: 1, kind: input, shape index: {}]   ;;  %s2224_s2 = inlined_call_operand.hbm [shape: bf16[2,128,128], index: 2, kind: input, shape index: {}]   ;;  %s2225_s3 = inlined_call_operand.hbm [shape: bf16[128,128], index: 3, kind: input, shape index: {}]   ;;  %s2226_s4 = inlined_call_operand.vmem [shape: f32[1,128], index: 4, kind: input, shape index: {}]   ;;  %s2227_s5 = inlined_call_operand.hbm [shape: f32[2,256,128], index: 5, kind: output, shape index: {}]  }
   0x1   :  { %2237 = sst [smem:[#allocation18_spill]] %s2222_s0 }
   0x2   :  { %2238 = sst [smem:[#allocation19_spill]] %s2223_s1 }
   0x3   :  { %10 = vsyncpa [#allocation3], 0 }
   0x4   :  { %12 = vsyncpa [#allocation3 + $0x1], 0 }
   0x5   :  { %13 = vsyncpa [#allocation6], 0 }
   0x6   :  { %14 = vsyncpa [#allocation4], 0 }
   0x7   :  { %16 = vsyncpa [#allocation4 + $0x1], 0  ;;  %s1892_s18 = smov 0   ;;  %s1894_s19 = smov 0  }
   0x8   :  { %s1896_s20 = smov 0   ;;  %s1898_s21 = smov 0  }
   0x9   :  { %s1900_s22 = smov 0   ;;  %s1902_s23 = smov 0  }
   0xa LB: > { %s1923_s24 = sadd.s32 4294967295, %s1851_s23   ;;  %s1293_s25 = sadd.s32 4294967294, %s1851_s23   ;;  %s1851_s23 = sphi %s1902_s23, %s22_s23   ;;  %s1847_s22 = sphi %s1900_s22, %s2269_s22   ;;  %s1843_s21 = sphi %s1898_s21, %s2268_s21   ;;  %s1839_s20 = sphi %s1896_s20, %s2267_s20   ;;  %s1835_s19 = sphi %s1894_s19, %s2266_s19   ;;  %s1831_s18 = sphi %s1892_s18, %s2265_s18  }
   0xb   : > { %p56_p0 = scmp.ne.s32.totalorder %s1835_s19, %s1831_s18  ;;  %p2234_p1 = scmp.eq.s32.totalorder %s1923_s24, 0 }
   0xc   : > { %p182_p3 = scmp.eq.s32.totalorder %s1293_s25, 1  ;;  %p1294_p5 = scmp.ge.s32.totalorder %s1851_s23, 1 }
   0xd   : > { %p1932_p4 = por %p2234_p1, %p56_p0  ;;  %p189_p7 = scmp.lt.s32.totalorder %s1851_s23, 3 }
   0xe   : > { %p1937_p6 = por %p182_p3, %p56_p0  ;;  %s1853_s29 = smov [#allocation5]  }
   0xf   : > { %p1942_p8 = pnand %p1294_p5, %p189_p7  ;;  %s204_s30 = sshll.u32 %s1853_s29, 4  ;;  %s205_s30 = int_to_ptr.vmem [resolvable:$true] %s204_s30 }
  0x10   : > { %s2240_s27 = scalar_select %p1937_p6, 1, 0 }
  0x11   : > { %p1525_p9 = pneg %p1942_p8  ;;  %s34_s7 = sadd.s32 1, %s1847_s22 }
  0x12   : > { %2241 = sst [smem:[#allocation15_spill]] %s2240_s27  ;;  %s1662_s8 = scalar_lea.vmem %s205_s30, 2048 }
  0x13   : > { %p1951_p11 = pnand %p1525_p9, %p2234_p1  ;;  %p1663_p13 = scmp.ne.s32.totalorder %s205_s30, %s1662_s8 }
  0x14   : > { %p1670_p5 = scmp.lt.s32.totalorder %s205_s30, %s205_s30  ;;  %p1671_p7 = scmp.lt.s32.totalorder %s1662_s8, %s1662_s8 }
  0x15   : > { %p2235_p12 = pneg %p1951_p11 }
  0x16   : > { %p1672_p2 = por %p1671_p7, %p1670_p5 }
  0x17   : > { %p1665_p0 = pnand %p1663_p13, %p2235_p12 }
  0x19   : > { %p1666_p3 = pneg %p1665_p0 }
  0x1b   : > { %p1673_p10 = pnand %p1672_p2, %p1666_p3 }
  0x1d   : > { %1676 = shalt.err (!%p1673_p10)
}
  0x1e   : > { %s2228_s9 = smov 64   ;;  %s2230_s10 = smov 4  }
  0x1f   : > { %s2244_s1 = sld [smem:[#allocation19_spill]]  ;;  %p36_p2 = scmp.ge.s32.totalorder %s34_s7, 2 }
  0x20   : > { %s43_s13 = sadd.s32 1, %s1839_s20  ;;  %p50_p9 = scmp.ne.s32.totalorder %s1839_s20, %s1835_s19 }
  0x21   : > { %p51_p10 = scmp.eq.s32.totalorder %s1851_s23, 0  ;;  %s2271_s7 = smov (%p36_p2, %s34_s7), 0 }
  0x22   : > { %2245 = sst [smem:[#allocation16_spill]] %s2271_s7  ;;  %p2247_p0 = scmp.eq.s32.totalorder %s1923_s24, 1 }
  0x23   : > { %p1975_p13 = por %p51_p10, %p50_p9  ;;  %s38_s16 = ssub.s32 %s1847_s22, %s2271_s7 }
  0x24   : > { %p1981_p3 = por %p2247_p0, %p50_p9  ;;  %p1545_p5 = scmp.lt.s32.totalorder %s1851_s23, 2 }
  0x25   : > { %1528 = dma.hbm_to_vmem [thread:$0]  (!%p1951_p11), %s2244_s1, 2048, %s205_s30, [#allocation6], %s2228_s9, %s2228_s9, %s2230_s10  }
  0x26   : > { %p41_p7 = scmp.eq.s32.totalorder %s38_s16, 0  ;;  %s234_s17 = sand.u32 1, %s1851_s23  }
  0x27   : > { %s236_s25 = sand.u32 1, %s1839_s20   ;;  %s1364_s8 = sshll.u32 %s1847_s22, 11 }
  0x28   : > { %s1991_s29 = scalar_select %p41_p7, %s1839_s20, %s43_s13  }
  0x29   : > { %s1298_s30 = sshll.u32 %s236_s25, 7  ;;  %s2250_s0 = sld [smem:[#allocation18_spill]] }
  0x2a   : > { %2249 = sst [smem:[#allocation17_spill]] %s1991_s29  ;;  %s238_s10 = scalar_lea.vmem [#allocation2], %s1298_s30 }
  0x2b   : > { %s247_s1 = sshll.u32 %s238_s10, 4  ;;  %p1999_p2 = pnand %p1545_p5, %p1975_p13  ;;  %s248_s1 = int_to_ptr.vmem [resolvable:$true] %s247_s1 }
  0x2c   : > { %s1301_s16 = sshll.u32 %s236_s25, 6  ;;  %s2003_s7 = scalar_lea.sflag [#allocation3], %s234_s17 }
  0x2d   : > { %p2236_p9 = pneg %p1999_p2  ;;  %s1690_s13 = scalar_lea.vmem %s248_s1, 2048 }
  0x2e   : > { %p1691_p10 = scmp.ne.s32.totalorder %s248_s1, %s1690_s13  ;;  %s1856_s10 = smov [#allocation2]  }
  0x2f   : > { %s246_s9 = scalar_lea.hbm %s2250_s0, %s1364_s8  ;;  %s1695_s14 = sshll.u32 %s1856_s10, 4  ;;  %s1696_s14 = int_to_ptr.vmem [resolvable:$false] %s1695_s14 }
  0x30   : > { %p1693_p0 = pnand %p1691_p10, %p2236_p9  ;;  %s1697_s30 = scalar_lea.vmem %s1696_s14, 4096 }
  0x31   : > { %p1698_p13 = scmp.lt.s32.totalorder %s248_s1, %s1696_s14  ;;  %p1699_p5 = scmp.lt.s32.totalorder %s1697_s30, %s1690_s13 }
  0x32   : > { %p1694_p7 = pneg %p1693_p0 }
  0x33   : > { %p1700_p1 = por %p1699_p5, %p1698_p13 }
  0x35   : > { %p1701_p12 = pnand %p1700_p1, %p1694_p7 }
  0x37   : > { %1704 = shalt.err (!%p1701_p12)
}
  0x38   : > { %s2252_s17 = smov 4   ;;  %s2253_s25 = smov 64  }
  0x39   : > { %1535 = dma.hbm_to_vmem [thread:$0]  (!%p1999_p2), %s246_s9, 2048, %s248_s1, %s2003_s7, %s2253_s25, %s2253_s25, %s2252_s17  }
  0x3a   : > { %s261_s8 = scalar_lea.vmem [#allocation7], %s1301_s16  ;;  %s1857_s12 = smov [#allocation8]  }
  0x3b   : > { %s268_s11 = sshll.u32 %s261_s8, 4  ;;  %s217_s10 = sshll.u32 %s1857_s12, 4  ;;  %s218_s10 = int_to_ptr.vmem [resolvable:$true] %s217_s10  ;;  %s269_s11 = int_to_ptr.vmem [resolvable:$true] %s268_s11 }
  0x3c   : > { %s1365_s0 = sshll.u32 %s1847_s22, 10  ;;  %s1716_s29 = scalar_lea.vmem %s218_s10, 1024 }
  0x3d   : > { %s2020_s30 = scalar_lea.hbm %s2224_s2, %s1365_s0  ;;  %p1717_p1 = scmp.ne.s32.totalorder %s218_s10, %s1716_s29 }
  0x3e   : > { %p2254_p12 = pneg %p1951_p11  ;;  %p1724_p7 = scmp.lt.s32.totalorder %s218_s10, %s218_s10 }
  0x3f   : > { %p1725_p13 = scmp.lt.s32.totalorder %s1716_s29, %s1716_s29 }
  0x40   : > { %p1719_p10 = pnand %p1717_p1, %p2254_p12 }
  0x41   : > { %p1726_p5 = por %p1725_p13, %p1724_p7 }
  0x42   : > { %p1720_p0 = pneg %p1719_p10 }
  0x44   : > { %p1727_p9 = pnand %p1726_p5, %p1720_p0 }
  0x46   : > { %1730 = shalt.err (!%p1727_p9)
}
  0x47   : > { %1531 = dma.hbm_to_vmem [thread:$0]  (!%p1951_p11), %s2225_s3, 1024, %s218_s10, [#allocation6], %s2253_s25, %s2253_s25, %s2252_s17  }
  0x48   : > { %s1744_s0 = scalar_lea.vmem %s269_s11, 1024  ;;  %p2255_p1 = pneg %p1999_p2 }
  0x49   : > { %p1745_p6 = scmp.ne.s32.totalorder %s269_s11, %s1744_s0  ;;  %s1858_s29 = smov [#allocation7]  }
  0x4a   : > { %s1749_s16 = sshll.u32 %s1858_s29, 4  ;;  %s1750_s16 = int_to_ptr.vmem [resolvable:$false] %s1749_s16 }
  0x4b   : > { %p1747_p12 = pnand %p1745_p6, %p2255_p1  ;;  %s1751_s8 = scalar_lea.vmem %s1750_s16, 2048 }
  0x4c   : > { %p1752_p9 = scmp.lt.s32.totalorder %s269_s11, %s1750_s16  ;;  %p1753_p0 = scmp.lt.s32.totalorder %s1751_s8, %s1744_s0 }
  0x4d   : > { %p1748_p10 = pneg %p1747_p12 }
  0x4e   : > { %p1754_p7 = por %p1753_p0, %p1752_p9 }
  0x50   : > { %p1755_p13 = pnand %p1754_p7, %p1748_p10 }
  0x52   : > { %1758 = shalt.err (!%p1755_p13)
}
  0x53   : > { %1538 = dma.hbm_to_vmem [thread:$0]  (!%p1999_p2), %s2020_s30, 1024, %s269_s11, %s2003_s7, %s2253_s25, %s2253_s25, %s2252_s17  }
  0x54   : > { %280 = sbr.rel (%p1942_p8) target bundleno = 408 (0x198), region = 40  ;;  %s282_s6 = sand.u32 (!%p1942_p8), 1, %s1923_s24  }
  0x55   : > { %s2047_s12 = sand.u32 (!%p1942_p8), 1, %s1835_s19   ;;  %s283_s14 = scalar_lea.sflag (!%p1942_p8), [#allocation3], %s282_s6 }
  0x56   : > { %s1305_s10 = sshll.u32 (!%p1942_p8), %s2047_s12, 7 }
  0x57   : > { %s2050_s13 = scalar_lea.vmem (!%p1942_p8), [#allocation2], %s1305_s10 }
  0x59   : > { %1810 = dma.done.wait (%p1932_p4), %s283_s14, 2048  }
  0x5a   : > { %1812 = vsyncadd (%p1932_p4), %s283_s14, 4294965248  ;;  %p2256_p6 = scmp.eq.s32.totalorder %s1923_s24, 0 }
  0x5c   : > { %1814 = dma.done.wait (%p2256_p6), [#allocation6], 2048   ;;  %p2257_p8 = pmov %p2256_p6 }
  0x5d   : > { %s1307_s27 = sshll.u32 %s2047_s12, 6 }
  0x5e   : > { %1816 = vsyncadd (%p2257_p8), [#allocation6], 4294965248  ;;  %s2061_s28 = scalar_lea.vmem [#allocation7], %s1307_s27 }
  0x5f   : > { %1818 = dma.done.wait (%p1932_p4), %s283_s14, 1024  }
  0x60   : > { %1820 = vsyncadd (%p1932_p4), %s283_s14, 4294966272  ;;  %p2258_p11 = pmov %p2256_p6 }
  0x61   : > { %p2259_p2 = pmov %p2256_p6 }
  0x62   : > { %1822 = dma.done.wait (%p2258_p11), [#allocation6], 1024  }
  0x63   : > { %1824 = vsyncadd (%p2259_p2), [#allocation6], 4294966272  ;;  %v1603_v0 = vld [vmem:[%s2061_s28 + $0x38] sm:$0xff]   ;;  %v1605_v2 = vld [vmem:[%s2061_s28 + $0x30] sm:$0xff]   ;;  %s1309_s7 = sshll.u32 %s2047_s12, 8  ;;  %s1366_s25 = sshll.u32 %s1843_s21, 12 }
  0x64   : > { %v1604_v1 = vld [vmem:[#allocation8 + $0x38] sm:$0xff]   ;;  %1415 = vmatprep.subr.bf16.mxu0 %v1603_v0  ;;  %v1606_v3 = vld [vmem:[#allocation8 + $0x30] sm:$0xff]   ;;  %v1607_v4 = vld [vmem:[%s2061_s28 + $0x28] sm:$0xff]   ;;  %s2103_s17 = scalar_lea.vmem [#allocation9], %s1309_s7  ;;  %s2170_s9 = scalar_lea.hbm %s2227_s5, %s1366_s25 }
  0x65   : > { %1463 = vmatprep.subr.bf16.mxu1 %v1604_v1  ;;  %1416 = vmatpush3.bf16.msra.mxu0 %v1603_v0  ;;  %v1608_v5 = vld [vmem:[#allocation8 + $0x28] sm:$0xff]   ;;  %v1609_v6 = vld [vmem:[%s2061_s28 + $0x20] sm:$0xff]   ;;  %v1611_v8 = vld [vmem:[%s2061_s28 + $0x18] sm:$0xff]   ;;  %s1164_s11 = sshll.u32 %s2103_s17, 4  ;;  %s1149_s0 = scalar_lea.sflag [#allocation4], %s2047_s12  ;;  %s2172_s11 = int_to_ptr.vmem [resolvable:$true] %s1164_s11 }
  0x66   : > { %1464 = vmatpush3.bf16.msra.mxu1 %v1604_v1  ;;  %1417 = vmatprep.subr.bf16.mxu0 %v1605_v2  ;;  %v1610_v7 = vld [vmem:[#allocation8 + $0x20] sm:$0xff]   ;;  %v1612_v9 = vld [vmem:[#allocation8 + $0x18] sm:$0xff]   ;;  %v1613_v10 = vld [vmem:[%s2061_s28 + $0x10] sm:$0xff]   ;;  %s1759_s21 = scalar_lea.vmem %s2172_s11, 4096  ;;  %s1859_s29 = smov [#allocation9]  }
  0x67   : > { %1465 = vmatprep.subr.bf16.mxu1 %v1606_v3  ;;  %v1614_v11 = vld [vmem:[#allocation8 + $0x10] sm:$0xff]   ;;  %v1619_v12 = vld [vmem:[#allocation5] sm:$0xff]   ;;  %v1615_v14 = vld [vmem:[%s2061_s28 + $0x8] sm:$0xff]   ;;  %p1760_p4 = scmp.ne.s32.totalorder %s2172_s11, %s1759_s21  ;;  %s1763_s16 = sshll.u32 %s1859_s29, 4  ;;  %s1764_s16 = int_to_ptr.vmem [resolvable:$false] %s1763_s16 }
  0x68   : > { %v1620_v13 = vld [vmem:[%s2050_s13] sm:$0xff]   ;;  %1431 = vmatprep.mubr.bf16.mxu0 %v1619_v12  ;;  %v1616_v15 = vld [vmem:[#allocation8 + $0x8] sm:$0xff]   ;;  %v1623_v20 = vld [vmem:[#allocation5 + $0x10] sm:$0xff]   ;;  %s1765_s8 = scalar_lea.vmem %s1764_s16, 8192  ;;  %p1766_p12 = scmp.lt.s32.totalorder %s2172_s11, %s1764_s16 }
  0x69   : > { %1418 = vmatpush3.bf16.msra.mxu0 %v1605_v2  ;;  %1479 = vmatprep.mubr.bf16.mxu1 %v1620_v13  ;;  %v1617_v16 = vld [vmem:[%s2061_s28] sm:$0xff]   ;;  %v1621_v18 = vld [vmem:[#allocation5 + $0x8] sm:$0xff]   ;;  %v1624_v21 = vld [vmem:[%s2050_s13 + $0x10] sm:$0xff]   ;;  %p1761_p5 = pnand %p1760_p4, %p1981_p3  ;;  %p1767_p10 = scmp.lt.s32.totalorder %s1765_s8, %s1759_s21 }
  0x6a   : > { %1466 = vmatpush3.bf16.msra.mxu1 %v1606_v3  ;;  %1419 = vmatprep.subr.bf16.mxu0 %v1607_v4  ;;  %v1618_v17 = vld [vmem:[#allocation8] sm:$0xff]   ;;  %v1622_v19 = vld [vmem:[%s2050_s13 + $0x8] sm:$0xff]   ;;  %v1625_v22 = vld [vmem:[#allocation5 + $0x18] sm:$0xff]  }
  0x6b   : > { %1467 = vmatprep.subr.bf16.mxu1 %v1608_v5  ;;  %v1626_v23 = vld [vmem:[%s2050_s13 + $0x18] sm:$0xff]   ;;  %v1627_v24 = vld [vmem:[#allocation5 + $0x20] sm:$0xff]   ;;  %v1629_v26 = vld [vmem:[#allocation5 + $0x28] sm:$0xff]   ;;  %p1762_p1 = pneg %p1761_p5  ;;  %p1768_p9 = por %p1767_p10, %p1766_p12 }
  0x6c   : > { %v1628_v25 = vld [vmem:[%s2050_s13 + $0x20] sm:$0xff]   ;;  %v1630_v27 = vld [vmem:[%s2050_s13 + $0x28] sm:$0xff]   ;;  %v1631_v28 = vld [vmem:[#allocation5 + $0x30] sm:$0xff]  }
  0x6d   : > { %1420 = vmatpush3.bf16.msra.mxu0 %v1607_v4  ;;  %v1632_v29 = vld [vmem:[%s2050_s13 + $0x30] sm:$0xff]   ;;  %v1633_v30 = vld [vmem:[#allocation5 + $0x38] sm:$0xff]   ;;  %v1635_v32 = vld [vmem:[#allocation5 + $0x40] sm:$0xff]   ;;  %p1769_p0 = pnand %p1768_p9, %p1762_p1 }
  0x6e   : > { %1468 = vmatpush3.bf16.msra.mxu1 %v1608_v5  ;;  %1421 = vmatprep.subr.bf16.mxu0 %v1609_v6  ;;  %v1634_v31 = vld [vmem:[%s2050_s13 + $0x38] sm:$0xff]   ;;  %v1636_v33 = vld [vmem:[%s2050_s13 + $0x40] sm:$0xff]   ;;  %v1637_v34 = vld [vmem:[#allocation5 + $0x48] sm:$0xff]  }
  0x6f   : > { %1469 = vmatprep.subr.bf16.mxu1 %v1610_v7  ;;  %v1638_v35 = vld [vmem:[%s2050_s13 + $0x48] sm:$0xff]   ;;  %v1639_v36 = vld [vmem:[#allocation5 + $0x50] sm:$0xff]   ;;  %v1641_v38 = vld [vmem:[#allocation5 + $0x58] sm:$0xff]  }
  0x70   : > { %v1640_v37 = vld [vmem:[%s2050_s13 + $0x50] sm:$0xff]   ;;  %v1642_v39 = vld [vmem:[%s2050_s13 + $0x58] sm:$0xff]   ;;  %v1643_v40 = vld [vmem:[#allocation5 + $0x60] sm:$0xff]  }
  0x71   : > { %1422 = vmatpush3.bf16.msra.mxu0 %v1609_v6  ;;  %v1644_v41 = vld [vmem:[%s2050_s13 + $0x60] sm:$0xff]   ;;  %v1645_v42 = vld [vmem:[#allocation5 + $0x68] sm:$0xff]   ;;  %v1647_v44 = vld [vmem:[#allocation5 + $0x70] sm:$0xff]  }
  0x72   : > { %1470 = vmatpush3.bf16.msra.mxu1 %v1610_v7  ;;  %1423 = vmatprep.subr.bf16.mxu0 %v1611_v8  ;;  %v1646_v43 = vld [vmem:[%s2050_s13 + $0x68] sm:$0xff]   ;;  %v1648_v45 = vld [vmem:[%s2050_s13 + $0x70] sm:$0xff]   ;;  %v1649_v46 = vld [vmem:[#allocation5 + $0x78] sm:$0xff]  }
  0x73   : > { %1471 = vmatprep.subr.bf16.mxu1 %v1612_v9  ;;  %v1650_v47 = vld [vmem:[%s2050_s13 + $0x78] sm:$0xff]   ;;  %v2098_v50 = vld [vmem:[%s2226_s4] ss:$0 sm:$0xff] }
  0x75   : > { %1424 = vmatpush3.bf16.msra.mxu0 %v1611_v8 }
  0x76   : > { %1472 = vmatpush3.bf16.msra.mxu1 %v1612_v9  ;;  %1425 = vmatprep.subr.bf16.mxu0 %v1613_v10 }
  0x77   : > { %1473 = vmatprep.subr.bf16.mxu1 %v1614_v11 }
  0x79   : > { %1426 = vmatpush3.bf16.msra.mxu0 %v1613_v10 }
  0x7a   : > { %1474 = vmatpush3.bf16.msra.mxu1 %v1614_v11  ;;  %1427 = vmatprep.subr.bf16.mxu0 %v1615_v14 }
  0x7b   : > { %1475 = vmatprep.subr.bf16.mxu1 %v1616_v15 }
  0x7d   : > { %1428 = vmatpush3.bf16.msra.mxu0 %v1615_v14 }
  0x7e   : > { %1476 = vmatpush3.bf16.msra.mxu1 %v1616_v15  ;;  %1429 = vmatprep.subr.bf16.mxu0 %v1617_v16 }
  0x7f   : > { %1477 = vmatprep.subr.bf16.mxu1 %v1618_v17 }
  0x81   : > { %1430 = vmatpush3.bf16.msra.mxu0 %v1617_v16 }
  0x82   : > { %1478 = vmatpush3.bf16.msra.mxu1 %v1618_v17 }
  0x84   : > { %1432 = vmatmul.mubr.bf16.vlgmr.msra.gmra.mxu0 %v1621_v18 }
  0x85   : > { %1480 = vmatmul.mubr.bf16.vlgmr.msra.gmra.mxu1 %v1622_v19  ;;  %1435 = vmatprep.mubr.bf16.mxu0 %v1623_v20 }
  0x86   : > { %1483 = vmatprep.mubr.bf16.mxu1 %v1624_v21 }
  0x8c   : > { %1436 = vmatmul.mubr.bf16.gmra.mxu0 %v1625_v22 }
  0x8d   : > { %1484 = vmatmul.mubr.bf16.gmra.mxu1 %v1626_v23  ;;  %1439 = vmatprep.mubr.bf16.mxu0 %v1627_v24 }
  0x8e   : > { %1487 = vmatprep.mubr.bf16.mxu1 %v1628_v25 }
  0x94   : > { %1440 = vmatmul.mubr.bf16.gmra.mxu0 %v1629_v26 }
  0x95   : > { %1488 = vmatmul.mubr.bf16.gmra.mxu1 %v1630_v27  ;;  %1443 = vmatprep.mubr.bf16.mxu0 %v1631_v28 }
  0x96   : > { %1491 = vmatprep.mubr.bf16.mxu1 %v1632_v29 }
  0x9c   : > { %1444 = vmatmul.mubr.bf16.gmra.mxu0 %v1633_v30 }
  0x9d   : > { %1492 = vmatmul.mubr.bf16.gmra.mxu1 %v1634_v31  ;;  %1447 = vmatprep.mubr.bf16.mxu0 %v1635_v32 }
  0x9e   : > { %1495 = vmatprep.mubr.bf16.mxu1 %v1636_v33 }
  0xa4   : > { %1448 = vmatmul.mubr.bf16.gmra.mxu0 %v1637_v34 }
  0xa5   : > { %1496 = vmatmul.mubr.bf16.gmra.mxu1 %v1638_v35  ;;  %1451 = vmatprep.mubr.bf16.mxu0 %v1639_v36 }
  0xa6   : > { %1499 = vmatprep.mubr.bf16.mxu1 %v1640_v37 }
  0xac   : > { %1452 = vmatmul.mubr.bf16.gmra.mxu0 %v1641_v38 }
  0xad   : > { %1500 = vmatmul.mubr.bf16.gmra.mxu1 %v1642_v39  ;;  %1455 = vmatprep.mubr.bf16.mxu0 %v1643_v40 }
  0xae   : > { %1503 = vmatprep.mubr.bf16.mxu1 %v1644_v41 }
  0xb4   : > { %1456 = vmatmul.mubr.bf16.gmra.mxu0 %v1645_v42 }
  0xb5   : > { %1504 = vmatmul.mubr.bf16.gmra.mxu1 %v1646_v43  ;;  %1459 = vmatprep.mubr.bf16.mxu0 %v1647_v44 }
  0xb6   : > { %1507 = vmatprep.mubr.bf16.mxu1 %v1648_v45 }
  0xbc   : > { %1460 = vmatmul.mubr.bf16.gmra.mxu0 %v1649_v46 }
  0xbd   : > { %1508 = vmatmul.mubr.bf16.gmra.mxu1 %v1650_v47 }
 0x144   : > { %v1433_v48 = vpop.f32.mrf.mxu0 }
 0x145   : > { %v1481_v49 = vpop.f32.mrf.mxu1 }
 0x146   : > { %v927_v51 = vadd.f32 %v1481_v49, %v1433_v48  ;;  %v613_v52 = vpop.f32.mrf.mxu0 }
 0x147   : > { %v918_v53 = vpop.f32.mrf.mxu1 }
 0x148   : > { %v1054_v54 = vadd.f32 %v2098_v50, %v927_v51  ;;  %v919_v55 = vadd.f32 %v918_v53, %v613_v52  ;;  %v1434_v56 = vpop.f32.mrf.mxu0 }
 0x149   : > { %v1482_v57 = vpop.f32.mrf.mxu1 }
 0x14a   : > { %v1086_v58 = vmax.f32 %v1054_v54, 0.0  ;;  %v1052_v59 = vadd.f32 %v2098_v50, %v919_v55  ;;  %v930_v60 = vadd.f32 %v1482_v57, %v1434_v56  ;;  %v616_v61 = vpop.f32.mrf.mxu0 }
 0x14b   : > { %v921_v62 = vpop.f32.mrf.mxu1 }
 0x14c   : > { %1118 = vst [vmem:[%s2103_s17 + $0x10] sm:$0xff] %v1086_v58  ;;  %v1084_v63 = vmax.f32 %v1052_v59, 0.0  ;;  %v1055_v0 = vadd.f32 %v2098_v50, %v930_v60  ;;  %v922_v1 = vadd.f32 %v921_v62, %v616_v61  ;;  %v1437_v2 = vpop.f32.mrf.mxu0 }
 0x14d   : > { %v1485_v3 = vpop.f32.mrf.mxu1 }
 0x14e   : > { %1116 = vst [vmem:[%s2103_s17] sm:$0xff] %v1084_v63  ;;  %v1087_v4 = vmax.f32 %v1055_v0, 0.0  ;;  %v1053_v5 = vadd.f32 %v2098_v50, %v922_v1  ;;  %v943_v6 = vadd.f32 %v1485_v3, %v1437_v2  ;;  %v629_v7 = vpop.f32.mrf.mxu0 }
 0x14f   : > { %v934_v8 = vpop.f32.mrf.mxu1 }
 0x150   : > { %1119 = vst [vmem:[%s2103_s17 + $0x18] sm:$0xff] %v1087_v4  ;;  %v1085_v9 = vmax.f32 %v1053_v5, 0.0  ;;  %v1058_v10 = vadd.f32 %v2098_v50, %v943_v6  ;;  %v935_v11 = vadd.f32 %v934_v8, %v629_v7  ;;  %v1438_v12 = vpop.f32.mrf.mxu0 }
 0x151   : > { %v1486_v13 = vpop.f32.mrf.mxu1 }
 0x152   : > { %1117 = vst [vmem:[%s2103_s17 + $0x8] sm:$0xff] %v1085_v9  ;;  %v1090_v14 = vmax.f32 %v1058_v10, 0.0  ;;  %v1056_v15 = vadd.f32 %v2098_v50, %v935_v11  ;;  %v946_v16 = vadd.f32 %v1486_v13, %v1438_v12  ;;  %v632_v17 = vpop.f32.mrf.mxu0 }
 0x153   : > { %v937_v18 = vpop.f32.mrf.mxu1 }
 0x154   : > { %1122 = vst [vmem:[%s2103_s17 + $0x30] sm:$0xff] %v1090_v14  ;;  %v1088_v19 = vmax.f32 %v1056_v15, 0.0  ;;  %v1059_v20 = vadd.f32 %v2098_v50, %v946_v16  ;;  %v938_v21 = vadd.f32 %v937_v18, %v632_v17  ;;  %v1441_v22 = vpop.f32.mrf.mxu0 }
 0x155   : > { %v1489_v23 = vpop.f32.mrf.mxu1 }
 0x156   : > { %1120 = vst [vmem:[%s2103_s17 + $0x20] sm:$0xff] %v1088_v19  ;;  %v1091_v24 = vmax.f32 %v1059_v20, 0.0  ;;  %v1057_v25 = vadd.f32 %v2098_v50, %v938_v21  ;;  %v959_v26 = vadd.f32 %v1489_v23, %v1441_v22  ;;  %v645_v27 = vpop.f32.mrf.mxu0 }
 0x157   : > { %v950_v28 = vpop.f32.mrf.mxu1 }
 0x158   : > { %1123 = vst [vmem:[%s2103_s17 + $0x38] sm:$0xff] %v1091_v24  ;;  %v1089_v29 = vmax.f32 %v1057_v25, 0.0  ;;  %v1062_v30 = vadd.f32 %v2098_v50, %v959_v26  ;;  %v951_v31 = vadd.f32 %v950_v28, %v645_v27  ;;  %v1442_v32 = vpop.f32.mrf.mxu0 }
 0x159   : > { %v1490_v33 = vpop.f32.mrf.mxu1 }
 0x15a   : > { %1121 = vst [vmem:[%s2103_s17 + $0x28] sm:$0xff] %v1089_v29  ;;  %v1094_v34 = vmax.f32 %v1062_v30, 0.0  ;;  %v1060_v35 = vadd.f32 %v2098_v50, %v951_v31  ;;  %v962_v36 = vadd.f32 %v1490_v33, %v1442_v32  ;;  %v648_v37 = vpop.f32.mrf.mxu0 }
 0x15b   : > { %v953_v38 = vpop.f32.mrf.mxu1 }
 0x15c   : > { %1126 = vst [vmem:[%s2103_s17 + $0x50] sm:$0xff] %v1094_v34  ;;  %v1092_v39 = vmax.f32 %v1060_v35, 0.0  ;;  %v1063_v40 = vadd.f32 %v2098_v50, %v962_v36  ;;  %v954_v41 = vadd.f32 %v953_v38, %v648_v37  ;;  %v1445_v42 = vpop.f32.mrf.mxu0 }
 0x15d   : > { %v1493_v43 = vpop.f32.mrf.mxu1 }
 0x15e   : > { %1124 = vst [vmem:[%s2103_s17 + $0x40] sm:$0xff] %v1092_v39  ;;  %v1095_v44 = vmax.f32 %v1063_v40, 0.0  ;;  %v1061_v45 = vadd.f32 %v2098_v50, %v954_v41  ;;  %v975_v46 = vadd.f32 %v1493_v43, %v1445_v42  ;;  %v661_v47 = vpop.f32.mrf.mxu0 }
 0x15f   : > { %v966_v48 = vpop.f32.mrf.mxu1 }
 0x160   : > { %1127 = vst [vmem:[%s2103_s17 + $0x58] sm:$0xff] %v1095_v44  ;;  %v1093_v49 = vmax.f32 %v1061_v45, 0.0  ;;  %v1066_v51 = vadd.f32 %v2098_v50, %v975_v46  ;;  %v967_v52 = vadd.f32 %v966_v48, %v661_v47  ;;  %v1446_v53 = vpop.f32.mrf.mxu0 }
 0x161   : > { %v1494_v54 = vpop.f32.mrf.mxu1 }
 0x162   : > { %1125 = vst [vmem:[%s2103_s17 + $0x48] sm:$0xff] %v1093_v49  ;;  %v1098_v55 = vmax.f32 %v1066_v51, 0.0  ;;  %v1064_v56 = vadd.f32 %v2098_v50, %v967_v52  ;;  %v978_v57 = vadd.f32 %v1494_v54, %v1446_v53  ;;  %v664_v58 = vpop.f32.mrf.mxu0 }
 0x163   : > { %v969_v59 = vpop.f32.mrf.mxu1 }
 0x164   : > { %1130 = vst [vmem:[%s2103_s17 + $0x70] sm:$0xff] %v1098_v55  ;;  %v1096_v60 = vmax.f32 %v1064_v56, 0.0  ;;  %v1067_v61 = vadd.f32 %v2098_v50, %v978_v57  ;;  %v970_v62 = vadd.f32 %v969_v59, %v664_v58  ;;  %v1449_v63 = vpop.f32.mrf.mxu0 }
 0x165   : > { %v1497_v0 = vpop.f32.mrf.mxu1 }
 0x166   : > { %1128 = vst [vmem:[%s2103_s17 + $0x60] sm:$0xff] %v1096_v60  ;;  %v1099_v1 = vmax.f32 %v1067_v61, 0.0  ;;  %v1065_v2 = vadd.f32 %v2098_v50, %v970_v62  ;;  %v991_v3 = vadd.f32 %v1497_v0, %v1449_v63  ;;  %v677_v4 = vpop.f32.mrf.mxu0 }
 0x167   : > { %v982_v5 = vpop.f32.mrf.mxu1 }
 0x168   : > { %1131 = vst [vmem:[%s2103_s17 + $0x78] sm:$0xff] %v1099_v1  ;;  %v1097_v6 = vmax.f32 %v1065_v2, 0.0  ;;  %v1070_v7 = vadd.f32 %v2098_v50, %v991_v3  ;;  %v983_v8 = vadd.f32 %v982_v5, %v677_v4  ;;  %v1450_v9 = vpop.f32.mrf.mxu0 }
 0x169   : > { %v1498_v10 = vpop.f32.mrf.mxu1 }
 0x16a   : > { %1129 = vst [vmem:[%s2103_s17 + $0x68] sm:$0xff] %v1097_v6  ;;  %v1102_v11 = vmax.f32 %v1070_v7, 0.0  ;;  %v1068_v12 = vadd.f32 %v2098_v50, %v983_v8  ;;  %v994_v13 = vadd.f32 %v1498_v10, %v1450_v9  ;;  %v680_v14 = vpop.f32.mrf.mxu0 }
 0x16b   : > { %v985_v15 = vpop.f32.mrf.mxu1 }
 0x16c   : > { %1134 = vst [vmem:[%s2103_s17 + $0x90] sm:$0xff] %v1102_v11  ;;  %v1100_v16 = vmax.f32 %v1068_v12, 0.0  ;;  %v1071_v17 = vadd.f32 %v2098_v50, %v994_v13  ;;  %v986_v18 = vadd.f32 %v985_v15, %v680_v14  ;;  %v1453_v19 = vpop.f32.mrf.mxu0 }
 0x16d   : > { %v1501_v20 = vpop.f32.mrf.mxu1 }
 0x16e   : > { %1132 = vst [vmem:[%s2103_s17 + $0x80] sm:$0xff] %v1100_v16  ;;  %v1103_v21 = vmax.f32 %v1071_v17, 0.0  ;;  %v1069_v22 = vadd.f32 %v2098_v50, %v986_v18  ;;  %v1007_v23 = vadd.f32 %v1501_v20, %v1453_v19  ;;  %v693_v24 = vpop.f32.mrf.mxu0 }
 0x16f   : > { %v998_v25 = vpop.f32.mrf.mxu1 }
 0x170   : > { %1135 = vst [vmem:[%s2103_s17 + $0x98] sm:$0xff] %v1103_v21  ;;  %v1101_v26 = vmax.f32 %v1069_v22, 0.0  ;;  %v1074_v27 = vadd.f32 %v2098_v50, %v1007_v23  ;;  %v999_v28 = vadd.f32 %v998_v25, %v693_v24  ;;  %v1454_v29 = vpop.f32.mrf.mxu0 }
 0x171   : > { %v1502_v30 = vpop.f32.mrf.mxu1 }
 0x172   : > { %1133 = vst [vmem:[%s2103_s17 + $0x88] sm:$0xff] %v1101_v26  ;;  %v1106_v31 = vmax.f32 %v1074_v27, 0.0  ;;  %v1072_v32 = vadd.f32 %v2098_v50, %v999_v28  ;;  %v1010_v33 = vadd.f32 %v1502_v30, %v1454_v29  ;;  %v696_v34 = vpop.f32.mrf.mxu0 }
 0x173   : > { %v1001_v35 = vpop.f32.mrf.mxu1 }
 0x174   : > { %1138 = vst [vmem:[%s2103_s17 + $0xb0] sm:$0xff] %v1106_v31  ;;  %v1104_v36 = vmax.f32 %v1072_v32, 0.0  ;;  %v1075_v37 = vadd.f32 %v2098_v50, %v1010_v33  ;;  %v1002_v38 = vadd.f32 %v1001_v35, %v696_v34  ;;  %v1457_v39 = vpop.f32.mrf.mxu0 }
 0x175   : > { %v1505_v40 = vpop.f32.mrf.mxu1 }
 0x176   : > { %1136 = vst [vmem:[%s2103_s17 + $0xa0] sm:$0xff] %v1104_v36  ;;  %v1107_v41 = vmax.f32 %v1075_v37, 0.0  ;;  %v1073_v42 = vadd.f32 %v2098_v50, %v1002_v38  ;;  %v1023_v43 = vadd.f32 %v1505_v40, %v1457_v39  ;;  %v709_v44 = vpop.f32.mrf.mxu0 }
 0x177   : > { %v1014_v45 = vpop.f32.mrf.mxu1 }
 0x178   : > { %1139 = vst [vmem:[%s2103_s17 + $0xb8] sm:$0xff] %v1107_v41  ;;  %v1105_v46 = vmax.f32 %v1073_v42, 0.0  ;;  %v1078_v47 = vadd.f32 %v2098_v50, %v1023_v43  ;;  %v1015_v48 = vadd.f32 %v1014_v45, %v709_v44  ;;  %v1458_v49 = vpop.f32.mrf.mxu0 }
 0x179   : > { %v1506_v51 = vpop.f32.mrf.mxu1 }
 0x17a   : > { %1137 = vst [vmem:[%s2103_s17 + $0xa8] sm:$0xff] %v1105_v46  ;;  %v1110_v52 = vmax.f32 %v1078_v47, 0.0  ;;  %v1076_v53 = vadd.f32 %v2098_v50, %v1015_v48  ;;  %v1026_v54 = vadd.f32 %v1506_v51, %v1458_v49  ;;  %v712_v55 = vpop.f32.mrf.mxu0 }
 0x17b   : > { %v1017_v56 = vpop.f32.mrf.mxu1 }
 0x17c   : > { %1142 = vst [vmem:[%s2103_s17 + $0xd0] sm:$0xff] %v1110_v52  ;;  %v1108_v57 = vmax.f32 %v1076_v53, 0.0  ;;  %v1079_v58 = vadd.f32 %v2098_v50, %v1026_v54  ;;  %v1018_v59 = vadd.f32 %v1017_v56, %v712_v55  ;;  %v1461_v60 = vpop.f32.mrf.mxu0 }
 0x17d   : > { %v1509_v61 = vpop.f32.mrf.mxu1 }
 0x17e   : > { %1140 = vst [vmem:[%s2103_s17 + $0xc0] sm:$0xff] %v1108_v57  ;;  %v1111_v62 = vmax.f32 %v1079_v58, 0.0  ;;  %v1077_v63 = vadd.f32 %v2098_v50, %v1018_v59  ;;  %v1039_v0 = vadd.f32 %v1509_v61, %v1461_v60  ;;  %v725_v1 = vpop.f32.mrf.mxu0 }
 0x17f   : > { %v1030_v2 = vpop.f32.mrf.mxu1 }
 0x180   : > { %1143 = vst [vmem:[%s2103_s17 + $0xd8] sm:$0xff] %v1111_v62  ;;  %v1109_v3 = vmax.f32 %v1077_v63, 0.0  ;;  %v1082_v4 = vadd.f32 %v2098_v50, %v1039_v0  ;;  %v1031_v5 = vadd.f32 %v1030_v2, %v725_v1  ;;  %v1462_v6 = vpop.f32.mrf.mxu0 }
 0x181   : > { %v1510_v7 = vpop.f32.mrf.mxu1 }
 0x182   : > { %1141 = vst [vmem:[%s2103_s17 + $0xc8] sm:$0xff] %v1109_v3  ;;  %v1114_v8 = vmax.f32 %v1082_v4, 0.0  ;;  %v1080_v9 = vadd.f32 %v2098_v50, %v1031_v5  ;;  %v1042_v10 = vadd.f32 %v1510_v7, %v1462_v6  ;;  %v728_v11 = vpop.f32.mrf.mxu0 }
 0x183   : > { %v1033_v12 = vpop.f32.mrf.mxu1 }
 0x184   : > { %1146 = vst [vmem:[%s2103_s17 + $0xf0] sm:$0xff] %v1114_v8  ;;  %v1112_v13 = vmax.f32 %v1080_v9, 0.0  ;;  %v1083_v14 = vadd.f32 %v2098_v50, %v1042_v10  ;;  %v1034_v15 = vadd.f32 %v1033_v12, %v728_v11 }
 0x186   : > { %1144 = vst [vmem:[%s2103_s17 + $0xe0] sm:$0xff] %v1112_v13  ;;  %v1115_v16 = vmax.f32 %v1083_v14, 0.0  ;;  %v1081_v17 = vadd.f32 %v2098_v50, %v1034_v15 }
 0x188   : > { %1147 = vst [vmem:[%s2103_s17 + $0xf8] sm:$0xff] %v1115_v16  ;;  %v1113_v18 = vmax.f32 %v1081_v17, 0.0 }
 0x18a   : > { %1145 = vst [vmem:[%s2103_s17 + $0xe8] sm:$0xff] %v1113_v18 }
 0x18b   : > { %1772 = shalt.err (!%p1769_p0)
}
 0x18c   : > { %s1773_s6 = scalar_lea.hbm %s2170_s9, 4096  ;;  %s1777_s13 = scalar_lea.hbm %s2227_s5, 8192 }
 0x18d   : > { %p1774_p7 = scmp.ne.s32.totalorder %s2170_s9, %s1773_s6  ;;  %p1778_p8 = scmp.lt.s32.totalorder %s2170_s9, %s2227_s5 }
 0x18e   : > { %p1779_p11 = scmp.lt.s32.totalorder %s1777_s13, %s1773_s6 }
 0x18f   : > { %p1775_p13 = pnand %p1774_p7, %p1981_p3 }
 0x190   : > { %p1780_p2 = por %p1779_p11, %p1778_p8 }
 0x191   : > { %p1776_p6 = pneg %p1775_p13 }
 0x193   : > { %p1781_p4 = pnand %p1780_p2, %p1776_p6 }
 0x195   : > { %1784 = shalt.err (!%p1781_p4)
}
 0x196   : > { %s1860_s24 = smov 128   ;;  %s1861_s26 = smov 8  }
 0x197   : > { %1523 = dma.vmem_to_hbm [thread:$0]  (%p1981_p3), %s2172_s11, 4096, %s2170_s9, %s1149_s0, %s1860_s24, %s1860_s24, %s1861_s26  }
 0x198 PF: > { %s2260_s7 = sld [smem:[#allocation15_spill]]  ;;  %s1179_s17 = sand.u32 1, %s1831_s18  }
 0x199   : > { %p2262_p1 = scmp.ge.s32.totalorder %s1851_s23, 2  ;;  %s1180_s25 = scalar_lea.sflag [#allocation4], %s1179_s17 }
 0x19e   : > { %p2261_p5 = scmp.ne.s32.totalorder %s2260_s7, 0 }
 0x1a0   : > { %p1540_p12 = pnand %p2262_p1, %p2261_p5 }
 0x1a2   : > { %p1541_p10 = pneg %p1540_p12 }
 0x1a4   : > { %1826 = dma.done.wait (%p1541_p10), %s1180_s25, 4096  }
 0x1a5   : > { %1828 = vsyncadd (%p1541_p10), %s1180_s25, 4294963200  ;;  %s22_s23 = sadd.s32 1, %s1851_s23   ;;  %s2263_s15 = sld [smem:[#allocation17_spill]] }
 0x1a6   : > { %p19_p9 = scmp.ge.s32.totalorder %s22_s23, 4   ;;  %s2264_s12 = sld [smem:[#allocation16_spill]] }
 0x1a7   : > { %s2265_s18 = smov %s1835_s19  ;;  %s2266_s19 = smov %s1839_s20 }
 0x1a8   : > { %s2268_s21 = smov %s1847_s22  ;;  %21 = sbr.rel (!%p19_p9) target bundleno = 10 (0xa), region = 105 }
 0x1ab   : > { %s2267_s20 = smov %s2263_s15 }
 0x1ac   : > { %s2269_s22 = smov %s2264_s12 }
 0x1ad   :  { %1185 = vsyncpa [#allocation3], 1 }
 0x1ae   :  { %1187 = vsyncpa [#allocation3 + $0x1], 1 }
 0x1af   :  { %1188 = vsyncpa [#allocation6], 1 }
 0x1b0   :  { %1189 = vsyncpa [#allocation4], 1 }
 0x1b1   :  { %1191 = vsyncpa [#allocation4 + $0x1], 1 }

</bundles_post_ra>
